<compile_context>
chip_gen: v5e
topology: v5e:2x2
jax: 0.10.0
libtpu: 0.0.40
codegen_flags: <defaults>
</compile_context>

<pallas_src>
import jax
import jax.numpy as jnp
from jax.experimental import pallas as pl
from jax.experimental.pallas import tpu as pltpu

_MiB = 1024 * 1024


def _make_focal_kernel(gamma, n_total, tile_n):
    gamma_f = float(gamma)
    # Integer-gamma specialization (repeated VPU multiplies instead of EUP log+exp pow).
    use_int_pow = gamma_f.is_integer() and 0.0 <= gamma_f <= 16.0
    gamma_i = int(gamma_f) if use_int_pow else None

    def kernel(logits_ref, targets_ref, alpha_ref, out_ref, acc_ref):
        ci = pl.program_id(0)                 # core-shard index ("parallel")
        ti = pl.program_id(1)                 # row-tile index within the shard ("arbitrary")
        tiles_per_core = pl.num_programs(1)

        @pl.when(ti == 0)
        def _():
            acc_ref[...] = jnp.zeros_like(acc_ref)

        logits = logits_ref[...].astype(jnp.float32)    # (T, C) f32 (upcast in-kernel)
        tgt = targets_ref[...]                          # (T, 1) i32
        alpha = alpha_ref[...].astype(jnp.float32)      # (1, C) f32
        t, c = logits.shape

        # UNclamped global tile index (the DMA index_map clamps; validity must not).
        tile_idx = ci * tiles_per_core + ti
        row = jax.lax.broadcasted_iota(jnp.int32, (t, 1), 0) + tile_idx * tile_n
        valid = row < n_total                                               # (T, 1) bool

        # Scrub padded / overflow rows so exp/log never see garbage (no inf/nan anywhere).
        logits = jnp.where(valid, logits, 0.0)
        tgt = jnp.where(valid, tgt, 0)

        # Boolean one-hot mask, used directly with jnp.where (no f32 one-hot, no extra muls).
        col = jax.lax.broadcasted_iota(jnp.int32, (t, c), 1)
        mask = col == tgt                                                   # (T, C) bool

        # Numerically stable cross-entropy; keep all row stats as (T, 1).
        m = jnp.max(logits, axis=-1, keepdims=True)                         # (T, 1)
        lse = m + jnp.log(jnp.sum(jnp.exp(logits - m), axis=-1, keepdims=True))
        logit_t = jnp.sum(jnp.where(mask, logits, 0.0), axis=-1, keepdims=True)
        alpha_t = jnp.sum(jnp.where(mask, alpha, 0.0), axis=-1, keepdims=True)
        ce = lse - logit_t                                                  # (T, 1)
        pt = jnp.exp(-ce)                                                   # (T, 1)

        one_minus_pt = 1.0 - pt
        if use_int_pow:
            mod = jnp.ones_like(one_minus_pt)
            for _ in range(gamma_i):
                mod = mod * one_minus_pt
        else:
            # Clamp base at 0 (pt can marginally exceed 1 from rounding).
            mod = jnp.maximum(one_minus_pt, 0.0) ** gamma_f

        focal = jnp.where(valid, alpha_t * mod * ce, 0.0)                   # (T, 1)

        # Scalar partial for this tile, broadcast-accumulated into the (8,128) scratch.
        acc_ref[...] += jnp.sum(focal)

        @pl.when(ti == tiles_per_core - 1)
        def _():
            out_ref[...] = acc_ref[...]        # every element of the block == core partial

    return kernel


def _pick_tile_n(n, c, in_bytes, budget_bytes=20 * _MiB, cap=1024):
    """Largest row tile whose working set fits a conservative VMEM budget."""
    if n <= 8:
        return max(int(n), 1)                 # block equals full array dim (allowed)
    per_row = (2 * c * in_bytes        # double-buffered logits
               + 2 * 128 * 4           # double-buffered (tile,1) targets, lane-padded
               + 5 * c * 4)            # in-kernel f32 temporaries
    tile = int(budget_bytes // per_row)
    tile = max(8, min(tile, int(cap)))
    tile = (tile // 8) * 8
    tile = min(tile, max(8, (n // 8) * 8))
    return tile


def _vmem_limit_bytes(per_step_bytes):
    """Raise the scoped-VMEM limit above chip defaults (16/32 MiB), capped by capacity."""
    cap = None
    try:
        cap = getattr(pltpu.get_tpu_info(), "vmem_capacity_bytes", None)
    except Exception:
        cap = None
    if not cap:
        cap = 64 * _MiB                       # v7x per-core physical: most conservative
    want = max(32 * _MiB, 2 * int(per_step_bytes))
    return int(min(cap * 3 // 4, want))


def focal_loss(logits, targets, alpha=None, gamma=2.0, reduction="mean", tile_n=None):
    """
    logits : (N, C) float32 or bfloat16
    targets: (N,)   integer class indices
    alpha  : None | scalar | (C,) per-class weights
    Returns scalar float32 focal loss ('mean' or 'sum' reduction).
    """
    n, c = logits.shape
    in_bytes = logits.dtype.itemsize

    # Per-class alpha vector (matches the PyTorch module's three alpha modes).
    if alpha is None:
        alpha_vec = jnp.ones((c,), dtype=jnp.float32)
    else:
        alpha_arr = jnp.asarray(alpha, dtype=jnp.float32)
        if alpha_arr.size > 1:
            alpha_vec = jnp.broadcast_to(alpha_arr.reshape(-1), (c,))
        else:
            alpha_vec = jnp.full((c,), alpha_arr.reshape(()), jnp.float32)

    targets2d = targets.reshape(n, 1).astype(jnp.int32)
    alpha2d = alpha_vec.reshape(1, c)

    tile = _pick_tile_n(n, c, in_bytes, cap=(tile_n if tile_n is not None else 1024))
    tiles_total = pl.cdiv(n, tile)
    num_cores = 2 if tiles_total > 1 else 1   # shards row tiles across both TCs on v7x
    tiles_per_core = pl.cdiv(tiles_total, num_cores)
    last_tile = tiles_total - 1

    # Clamp overflow tiles (last core may have fewer real tiles) so the DMA stays in
    # bounds; the kernel masks them out using the UNclamped tile index.
    def row_block(ci, ti):
        return (jnp.minimum(ci * tiles_per_core + ti, last_tile), 0)

    per_step_bytes = (2 * tile * c * in_bytes
                      + 2 * tile * 128 * 4
                      + 5 * tile * c * 4
                      + 3 * 8 * 128 * 4)

    cost = pl.CostEstimate(
        flops=int(6 * n * c),
        transcendentals=int(n * (c + 2)),
        bytes_accessed=int(n * c * in_bytes + n * 4 + c * 4 + num_cores * 8 * 128 * 4),
    )

    partials = pl.pallas_call(
        _make_focal_kernel(gamma, n, tile),
        out_shape=jax.ShapeDtypeStruct((num_cores * 8, 128), jnp.float32),
        grid_spec=pltpu.PrefetchScalarGridSpec(
            num_scalar_prefetch=0,
            grid=(num_cores, tiles_per_core),
            in_specs=[
                pl.BlockSpec((tile, c), row_block),           # logits tile
                pl.BlockSpec((tile, 1), row_block),           # targets tile
                pl.BlockSpec((1, c), lambda ci, ti: (0, 0)),  # alpha (grid-invariant)
            ],
            out_specs=pl.BlockSpec((8, 128), lambda ci, ti: (ci, 0)),  # one block per core
            scratch_shapes=[pltpu.VMEM((8, 128), jnp.float32)],        # per-core accumulator
        ),
        compiler_params=pltpu.CompilerParams(
            dimension_semantics=("parallel", "arbitrary"),
            vmem_limit_bytes=_vmem_limit_bytes(per_step_bytes),
        ),
        cost_estimate=cost,
    )(logits, targets2d, alpha2d)

    # Every element of each core's (8,128) block equals that core's partial sum;
    # pick one element per block (num_cores scalars) and sum.
    total = jnp.sum(partials[::8, 0])
    if reduction == "mean":
        return total / n                 # true N, independent of padding
    elif reduction == "sum":
        return total
    else:
        # TODO(synk): reduction='none' needs a per-sample output spec; not implemented.
        raise NotImplementedError("reduction='none' is not supported by this kernel")


def _focal_loss_ref(logits, targets, alpha=None, gamma=2.0, reduction="mean"):
    # Pure-JAX reference (mirrors the PyTorch forward exactly).
    logits = logits.astype(jnp.float32)
    logp = jax.nn.log_softmax(logits, axis=-1)
    ce = -jnp.take_along_axis(logp, targets[:, None], axis=-1)[:, 0]
    pt = jnp.exp(-ce)
    if alpha is None:
        alpha_t = 1.0
    else:
        alpha_arr = jnp.asarray(alpha, dtype=jnp.float32).reshape(-1)
        alpha_t = alpha_arr[targets] if alpha_arr.size > 1 else alpha_arr[0]
    focal = alpha_t * (1.0 - pt) ** gamma * ce
    return focal.mean() if reduction == "mean" else focal.sum()


if __name__ == "__main__":
    key = jax.random.PRNGKey(0)
    k1, k2, k3, k4 = jax.random.split(key, 4)
    checks = []

    # Small shape, N not a multiple of 8 -> ragged-tile masking + one tile per core.
    N, C = 12, 16
    logits = jax.random.normal(k1, (N, C), dtype=jnp.float32) * 2.0
    targets = jax.random.randint(k2, (N,), 0, C, dtype=jnp.int32)
    alpha = 0.25 + 0.05 * jnp.arange(C, dtype=jnp.float32)

    for gamma in (2.0, 1.5):   # integer-power path and clamped-pow path
        out = jax.block_until_ready(focal_loss(logits, targets, alpha, gamma=gamma))
        ref = _focal_loss_ref(logits, targets, alpha, gamma=gamma)
        checks.append(("small-mean", gamma, float(out), float(ref),
                       bool(jnp.allclose(out, ref, rtol=1e-4, atol=1e-5))))

    # sum reduction + scalar alpha, and no alpha.
    out = jax.block_until_ready(focal_loss(logits, targets, 0.25, gamma=2.0, reduction="sum"))
    ref = _focal_loss_ref(logits, targets, 0.25, gamma=2.0, reduction="sum")
    checks.append(("small-sum-scalar-alpha", 2.0, float(out), float(ref),
                   bool(jnp.allclose(out, ref, rtol=1e-4, atol=1e-5))))

    out = jax.block_until_ready(focal_loss(logits, targets, None, gamma=2.0))
    ref = _focal_loss_ref(logits, targets, None, gamma=2.0)
    checks.append(("small-no-alpha", 2.0, float(out), float(ref),
                   bool(jnp.allclose(out, ref, rtol=1e-4, atol=1e-5))))

    # Larger N (still tiny) -> multiple inner tiles per core, uneven 2-core split,
    # ragged final tile, and a clamped/masked overflow tile on the last core.
    N2 = 2053
    logits2 = jax.random.normal(k3, (N2, C), dtype=jnp.float32) * 2.0
    targets2 = jax.random.randint(k4, (N2,), 0, C, dtype=jnp.int32)
    out = jax.block_until_ready(focal_loss(logits2, targets2, alpha, gamma=2.0))
    ref = _focal_loss_ref(logits2, targets2, alpha, gamma=2.0)
    checks.append(("multi-tile-mean", 2.0, float(out), float(ref),
                   bool(jnp.allclose(out, ref, rtol=1e-4, atol=1e-5))))

    ok = all(chk[-1] for chk in checks)
    if not ok:
        for chk in checks:
            if not chk[-1]:
                print("MISMATCH", chk)
    assert ok
    print("KERNEL_OK")
</pallas_src>

<mosaic_0001>
module attributes {stable_mosaic.version = 11 : i64} {
  func.func @kernel(%arg0: i32, %arg1: i32, %arg2: memref<8x16xf32, #tpu.memory_space<vmem>>, %arg3: memref<8x1xi32, #tpu.memory_space<vmem>>, %arg4: memref<1x16xf32, #tpu.memory_space<vmem>>, %arg5: memref<8x128xf32, #tpu.memory_space<vmem>>, %arg6: memref<8x128xf32, #tpu.memory_space<vmem>>) attributes {dimension_semantics = [#tpu.dimension_semantics<parallel>, #tpu.dimension_semantics<arbitrary>], iteration_bounds = array<i64: 2, 1>, scalar_prefetch = 0 : i64, scratch_operands = 1 : i64, tpu.core_type = #tpu.core_type<tc>, window_params = [{transform_indices = @transform_0, window_bounds = array<i64: 8, 16>}, {transform_indices = @transform_1, window_bounds = array<i64: 8, 1>}, {pipeline_mode = #tpu.pipeline_mode<synchronous>, transform_indices = @transform_2, window_bounds = array<i64: 1, 16>}, {transform_indices = @transform_3, window_bounds = array<i64: 8, 128>}]} {
    %c0_i32 = arith.constant 0 : i32
    %0 = arith.cmpi eq, %arg1, %c0_i32 : i32
    %1 = arith.extui %0 : i1 to i32
    %c0_i32_0 = arith.constant 0 : i32
    %2 = arith.cmpi ne, %1, %c0_i32_0 : i32
    scf.if %2 {
      %cst_24 = arith.constant 0.000000e+00 : f32
      %66 = vector.broadcast %cst_24 : f32 to vector<8x128xf32>
      %c0_25 = arith.constant 0 : index
      %c0_26 = arith.constant 0 : index
      %67 = vector.load %arg6[%c0_25, %c0_26] : memref<8x128xf32, #tpu.memory_space<vmem>>, vector<8x128xf32>
      tpu.vector_store %arg6[%c0_25, %c0_26], %66 {strides = array<i32>} : memref<8x128xf32, #tpu.memory_space<vmem>>, vector<8x128xf32>,
    } else {
    }
    %c0 = arith.constant 0 : index
    %c0_1 = arith.constant 0 : index
    %3 = vector.load %arg2[%c0, %c0_1] : memref<8x16xf32, #tpu.memory_space<vmem>>, vector<8x16xf32>
    %c0_2 = arith.constant 0 : index
    %c0_3 = arith.constant 0 : index
    %4 = vector.load %arg3[%c0_2, %c0_3] : memref<8x1xi32, #tpu.memory_space<vmem>>, vector<8x1xi32>
    %c0_4 = arith.constant 0 : index
    %c0_5 = arith.constant 0 : index
    %5 = vector.load %arg4[%c0_4, %c0_5] : memref<1x16xf32, #tpu.memory_space<vmem>>, vector<1x16xf32>
    %c1_i32 = arith.constant 1 : i32
    %6 = arith.muli %arg0, %c1_i32 : i32
    %7 = arith.addi %6, %arg1 : i32
    %8 = tpu.iota {dimensions = array<i32: 0>} : vector<8x1xi32>
    %c8_i32 = arith.constant 8 : i32
    %9 = arith.muli %7, %c8_i32 : i32
    %10 = vector.broadcast %9 : i32 to vector<8x1xi32>
    %11 = arith.addi %8, %10 : vector<8x1xi32>
    %c12_i32 = arith.constant 12 : i32
    %12 = vector.broadcast %c12_i32 : i32 to vector<8x1xi32>
    %13 = arith.cmpi slt, %11, %12 : vector<8x1xi32>
    %cst = arith.constant 0.000000e+00 : f32
    %14 = vector.shape_cast %13 : vector<8x1xi1> to vector<8x1xi1>
    %15 = vector.broadcast %14 : vector<8x1xi1> to vector<8x16xi1>
    %16 = vector.broadcast %cst : f32 to vector<8x16xf32>
    %17 = arith.select %15, %3, %16 : vector<8x16xi1>, vector<8x16xf32>
    %c0_i32_6 = arith.constant 0 : i32
    %18 = vector.broadcast %c0_i32_6 : i32 to vector<8x1xi32>
    %19 = arith.select %13, %4, %18 : vector<8x1xi1>, vector<8x1xi32>
    %20 = tpu.iota {dimensions = array<i32: 1>} : vector<8x16xi32>
    %21 = vector.broadcast %19 : vector<8x1xi32> to vector<8x16xi32>
    %22 = arith.cmpi eq, %20, %21 : vector<8x16xi32>
    %cst_7 = arith.constant dense<0xFF800000> : vector<8xf32>
    %23 = vector.multi_reduction <maximumf>, %17, %cst_7 [1] : vector<8x16xf32> to vector<8xf32>
    %24 = vector.shape_cast %23 : vector<8xf32> to vector<8x1xf32>
    %25 = vector.broadcast %24 : vector<8x1xf32> to vector<8x16xf32>
    %26 = arith.subf %17, %25 : vector<8x16xf32>
    %27 = math.exp %26 : vector<8x16xf32>
    %cst_8 = arith.constant dense<0.000000e+00> : vector<8xf32>
    %28 = vector.multi_reduction <add>, %27, %cst_8 [1] : vector<8x16xf32> to vector<8xf32>
    %29 = vector.shape_cast %28 : vector<8xf32> to vector<8x1xf32>
    %30 = math.log %29 : vector<8x1xf32>
    %31 = arith.addf %24, %30 : vector<8x1xf32>
    %cst_9 = arith.constant 0.000000e+00 : f32
    %32 = vector.broadcast %cst_9 : f32 to vector<8x16xf32>
    %33 = arith.select %22, %17, %32 : vector<8x16xi1>, vector<8x16xf32>
    %cst_10 = arith.constant dense<0.000000e+00> : vector<8xf32>
    %34 = vector.multi_reduction <add>, %33, %cst_10 [1] : vector<8x16xf32> to vector<8xf32>
    %35 = vector.shape_cast %34 : vector<8xf32> to vector<8x1xf32>
    %cst_11 = arith.constant 0.000000e+00 : f32
    %36 = vector.shape_cast %5 : vector<1x16xf32> to vector<1x16xf32>
    %37 = vector.broadcast %36 : vector<1x16xf32> to vector<8x16xf32>
    %38 = vector.broadcast %cst_11 : f32 to vector<8x16xf32>
    %39 = arith.select %22, %37, %38 : vector<8x16xi1>, vector<8x16xf32>
    %cst_12 = arith.constant dense<0.000000e+00> : vector<8xf32>
    %40 = vector.multi_reduction <add>, %39, %cst_12 [1] : vector<8x16xf32> to vector<8xf32>
    %41 = vector.shape_cast %40 : vector<8xf32> to vector<8x1xf32>
    %42 = arith.subf %31, %35 : vector<8x1xf32>
    %cst_13 = arith.constant 0.000000e+00 : f32
    %43 = vector.broadcast %cst_13 : f32 to vector<8x1xf32>
    %44 = arith.subf %43, %42 : vector<8x1xf32>
    %45 = math.exp %44 : vector<8x1xf32>
    %cst_14 = arith.constant 1.000000e+00 : f32
    %46 = vector.broadcast %cst_14 : f32 to vector<8x1xf32>
    %47 = arith.subf %46, %45 : vector<8x1xf32>
    %cst_15 = arith.constant 1.000000e+00 : f32
    %48 = vector.broadcast %cst_15 : f32 to vector<8x1xf32>
    %49 = arith.mulf %48, %47 : vector<8x1xf32>
    %50 = arith.mulf %49, %47 : vector<8x1xf32>
    %51 = arith.mulf %41, %50 : vector<8x1xf32>
    %52 = arith.mulf %51, %42 : vector<8x1xf32>
    %cst_16 = arith.constant 0.000000e+00 : f32
    %53 = vector.broadcast %cst_16 : f32 to vector<8x1xf32>
    %54 = arith.select %13, %52, %53 : vector<8x1xi1>, vector<8x1xf32>
    %c0_17 = arith.constant 0 : index
    %c0_18 = arith.constant 0 : index
    %55 = vector.load %arg6[%c0_17, %c0_18] : memref<8x128xf32, #tpu.memory_space<vmem>>, vector<8x128xf32>
    %56 = vector.shape_cast %54 : vector<8x1xf32> to vector<1x8x1xf32>
    %cst_19 = arith.constant dense<0.000000e+00> : vector<1xf32>
    %57 = vector.multi_reduction <add>, %56, %cst_19 [1, 2] : vector<1x8x1xf32> to vector<1xf32>
    %58 = vector.shape_cast %57 : vector<1xf32> to vector<1x1x1xf32>
    %59 = vector.extract %58[0, 0, 0] : f32 from vector<1x1x1xf32>
    %60 = vector.broadcast %59 : f32 to vector<8x128xf32>
    %61 = arith.addf %55, %60 : vector<8x128xf32>
    %c0_20 = arith.constant 0 : index
    %c0_21 = arith.constant 0 : index
    %62 = vector.load %arg6[%c0_20, %c0_21] : memref<8x128xf32, #tpu.memory_space<vmem>>, vector<8x128xf32>
    tpu.vector_store %arg6[%c0_20, %c0_21], %61 {strides = array<i32>} : memref<8x128xf32, #tpu.memory_space<vmem>>, vector<8x128xf32>,
    %c0_i32_22 = arith.constant 0 : i32
    %63 = arith.cmpi eq, %arg1, %c0_i32_22 : i32
    %64 = arith.extui %63 : i1 to i32
    %c0_i32_23 = arith.constant 0 : i32
    %65 = arith.cmpi ne, %64, %c0_i32_23 : i32
    scf.if %65 {
      %c0_24 = arith.constant 0 : index
      %c0_25 = arith.constant 0 : index
      %66 = vector.load %arg6[%c0_24, %c0_25] : memref<8x128xf32, #tpu.memory_space<vmem>>, vector<8x128xf32>
      %c0_26 = arith.constant 0 : index
      %c0_27 = arith.constant 0 : index
      %67 = vector.load %arg5[%c0_26, %c0_27] : memref<8x128xf32, #tpu.memory_space<vmem>>, vector<8x128xf32>
      tpu.vector_store %arg5[%c0_26, %c0_27], %66 {strides = array<i32>} : memref<8x128xf32, #tpu.memory_space<vmem>>, vector<8x128xf32>,
    } else {
    }
    return
  }
  func.func @transform_0(%arg0: i32, %arg1: i32) -> (i32, i32) {
    %c1_i32 = arith.constant 1 : i32
    %0 = arith.muli %arg0, %c1_i32 : i32
    %1 = arith.addi %0, %arg1 : i32
    %c1_i32_0 = arith.constant 1 : i32
    %2 = arith.minsi %1, %c1_i32_0 : i32
    %c0_i32 = arith.constant 0 : i32
    %c0_i32_1 = arith.constant 0 : i32
    return %2, %c0_i32 : i32, i32
  }
  func.func @transform_1(%arg0: i32, %arg1: i32) -> (i32, i32) {
    %c1_i32 = arith.constant 1 : i32
    %0 = arith.muli %arg0, %c1_i32 : i32
    %1 = arith.addi %0, %arg1 : i32
    %c1_i32_0 = arith.constant 1 : i32
    %2 = arith.minsi %1, %c1_i32_0 : i32
    %c0_i32 = arith.constant 0 : i32
    %c0_i32_1 = arith.constant 0 : i32
    return %2, %c0_i32 : i32, i32
  }
  func.func @transform_2(%arg0: i32, %arg1: i32) -> (i32, i32) {
    %c0_i32 = arith.constant 0 : i32
    %c0_i32_0 = arith.constant 0 : i32
    %c0_i32_1 = arith.constant 0 : i32
    return %c0_i32, %c0_i32_0 : i32, i32
  }
  func.func @transform_3(%arg0: i32, %arg1: i32) -> (i32, i32) {
    %c0_i32 = arith.constant 0 : i32
    %c0_i32_0 = arith.constant 0 : i32
    return %arg0, %c0_i32 : i32, i32
  }
}

</mosaic_0001>

<bundles_post_ra>
// kernel: tpu_custom_call.1
= control target key start
LH: loop header
LB: loop body
LE: loop exit
PB: predicated region body
PF: predicated region fallthrough
CT: control target
= control target key end

     0   :  { %8 = vsyncpa [#allocation4], 0  ;;  %s710_s0 = inlined_call_operand.vmem [shape: f32[12,16], index: 0, kind: input, shape index: {}]   ;;  %s711_s1 = inlined_call_operand.vmem [shape: s32[12,1], index: 1, kind: input, shape index: {}]   ;;  %s712_s2 = inlined_call_operand.vmem [shape: f32[1,16], index: 2, kind: input, shape index: {}]   ;;  %s713_s3 = inlined_call_operand.hbm [shape: f32[16,128], index: 3, kind: output, shape index: {}]  }
   0x1   :  { %10 = vsyncpa [#allocation4 + $0x1], 0  ;;  %s596_s12 = smov 0   ;;  %s598_s13 = smov 0  }
   0x2   :  { %s600_s14 = smov 0   ;;  %s602_s15 = smov 0  }
   0x3   :  { %s604_s16 = smov 0   ;;  %s606_s17 = smov 0  }
   0x4 LB: > { %s410_s18 = sadd.s32 4294967295, %s573_s17   ;;  %s411_s19 = sadd.s32 4294967294, %s573_s17   ;;  %s573_s17 = sphi %s606_s17, %s16_s17   ;;  %s569_s16 = sphi %s604_s16, %s720_s16   ;;  %s565_s15 = sphi %s602_s15, %s719_s15   ;;  %s561_s14 = sphi %s600_s14, %s718_s14   ;;  %s557_s13 = sphi %s598_s13, %s717_s13   ;;  %s553_s12 = sphi %s596_s12, %s716_s12  }
   0x5   : > { %s28_s20 = sadd.s32 1, %s569_s16  ;;  %s120_s21 = sadd.s32 1, %s561_s14 }
   0x6   : > { %p30_p0 = scmp.ge.s32.totalorder %s28_s20, 2  ;;  %p130_p1 = scmp.ne.s32.totalorder %s561_s14, %s557_s13 }
   0x7   : > { %p131_p2 = scmp.eq.s32.totalorder %s410_s18, 1  ;;  %p136_p3 = scmp.ne.s32.totalorder %s557_s13, %s553_s12 }
   0x8   : > { %s722_s20 = smov (%p30_p0, %s28_s20), 0  ;;  %p137_p5 = scmp.eq.s32.totalorder %s411_s19, 1 }
   0x9   : > { %p636_p4 = por %p131_p2, %p130_p1  ;;  %s117_s23 = ssub.s32 %s569_s16, %s722_s20 }
   0xa   : > { %p414_p6 = scmp.ge.s32.totalorder %s573_s17, 1  ;;  %p118_p7 = scmp.eq.s32.totalorder %s117_s23, 0 }
   0xb   : > { %p643_p8 = por %p137_p5, %p136_p3  ;;  %p184_p9 = scmp.lt.s32.totalorder %s573_s17, 3 }
   0xc   : > { %s649_s25 = scalar_select %p118_p7, %s561_s14, %s120_s21  }
   0xd   : > { %p185_p10 = pnand %p414_p6, %p184_p9 }
   0xe   : > { %p218_p11 = scmp.lt.s32.totalorder (!%p185_p10), %s565_s15, 1  ;;  %s424_s26 = sshll.u32 (!%p185_p10), %s565_s15, 3 }
   0xf   : > { %188 = sbr.rel (%p185_p10) target bundleno = 489 (0x1e9), region = 32  ;;  %s214_s10 = sand.u32 (!%p185_p10), 1, %s557_s13  }
  0x10   : > { %s415_s11 = sshll.u32 (!%p185_p10), %s214_s10, 3  ;;  %s326_s21 = scalar_lea.hbm (!%p185_p10), %s713_s3, %s424_s26 }
  0x11   : > { %s216_s23 = scalar_lea.vmem (!%p185_p10), [#allocation3], %s415_s11  ;;  %s316_s30 = scalar_lea.sflag (!%p185_p10), [#allocation4], %s214_s10 }
  0x14   : > { %v246_v0 = vlaneseq  ;;  %v249_v1 = vstv %s424_s26  ;;  %v575_v2 = vmov 0   ;;  %s219_s27 = scalar_select %p218_p11, %s565_s15, 1  ;;  %vm262_vm1 = vcmask 130048   ;;  %v488_v16 = vld [vmem:[%s712_s2] ss:$0 sm:$0xff] }
  0x15   : > { %487 = vset.pattern.permute.xlu0 %v575_v2  ;;  %vm296_vm3 = vcmask 7168   ;;  %s515_s26 = scalar_lea.hbm %s713_s3, 16 }
  0x16   : > { %v247_v3 = vshrl.u32 %v246_v0, 7  ;;  %s724_s27 = smov (!%p218_p11, %s219_s27), 1  ;;  %v257_v15 = vand.u32 127, %v246_v0 }
  0x17   : > { %s419_s28 = sshll.u32 %s724_s27, 3  ;;  %s328_s27 = sshll.u32 %s216_s23, 4  ;;  %s329_s27 = int_to_ptr.vmem [resolvable:$true] %s328_s27 }
  0x18   : > { %v250_v4 = vadd.s32 %v249_v1, %v247_v3  ;;  %s223_s4 = scalar_lea.vmem %s710_s0, %s419_s28  ;;  %s233_s7 = scalar_lea.vmem %s711_s1, %s419_s28 }
  0x19   : > { %v242_v5 = vld [vmem:[%s223_s4] sm:$0xff]  ;;  %s330_s28 = sshll.u32 %s326_s21, 4  ;;  %s331_s28 = int_to_ptr.hbm [resolvable:$true] %s330_s28 }
  0x1a   : > { %vm251_vm0 = vcmp.lt.s32.totalorder %v250_v4, 12  ;;  %v243_v8 = vld [vmem:[%s233_s7] sm:$0xff]  ;;  %s509_s4 = sshra.s32 %s331_s28, 4  ;;  %s510_s4 = int_to_ptr.hbm [resolvable:$true] %s509_s4 }
  0x1b   : > { %v254_v6 = vsel %vm251_vm0, %v242_v5, 0.0  ;;  %v255_v9 = vsel %vm251_vm0, %v243_v8, 0  ;;  %s511_s5 = scalar_lea.hbm %s510_s4, 8  ;;  %p516_p1 = scmp.lt.s32.totalorder %s510_s4, %s713_s3 }
  0x1c   : > { %v263_v7 = vsel %vm262_vm1, %v254_v6, -inf  ;;  %p512_p12 = scmp.ne.s32.totalorder %s510_s4, %s511_s5  ;;  %p517_p2 = scmp.lt.s32.totalorder %s515_s26, %s511_s5 }
  0x1d   : > { %264 = vmax.xlane.f32.xlu0 %v263_v7 }
  0x1e   : > { %p513_p13 = pnand %p512_p12, %p636_p4  ;;  %p518_p3 = por %p517_p2, %p516_p1 }
  0x20   : > { %p514_p0 = pneg %p513_p13 }
  0x22   : > { %p519_p5 = pnand %p518_p3, %p514_p0 }
  0x31   : > { %259 = vperm.xlu0 %487, %v255_v9  }
  0x90   : > { %v265_v10 = vpop.xlane.xlu0 %264 }
  0x91   : > { %v266_v11 = vsub.f32 %v254_v6, %v265_v10 }
  0x93   : > { %v267_v12 = vmul.f32 1.442695, %v266_v11 }
  0x95   : > { %489 = vpow2.f32 %v267_v12 }
  0x9b   : > { %v490_v13 = vpop.eup %489 }
  0x9c   : > { %v269_v14 = vsel %vm262_vm1, %v490_v13, 0.0 }
  0x9d   : > { %270 = vadd.xlane.f32.xlu1 %v269_v14 }
  0xa3   : > { %v260_v17 = vpop.permute.xlu0 %259 }
  0xa4   : > { %vm261_vm2 = vcmp.eq.s32.totalorder %v257_v15, %v260_v17 }
  0xa5   : > { %v282_v18 = vsel %vm261_vm2, %v488_v16, 0.0  ;;  %v275_v19 = vsel %vm261_vm2, %v254_v6, 0.0 }
  0xa6   : > { %v283_v20 = vsel %vm262_vm1, %v282_v18, 0.0  ;;  %v276_v21 = vsel %vm262_vm1, %v275_v19, 0.0 }
  0xa7   : > { %284 = vadd.xlane.f32.xlu2 %v283_v20  ;;  %277 = vadd.xlane.f32.xlu1 %v276_v21 }
 0x110   : > { %v271_v22 = vpop.xlane.xlu1 %270 }
 0x111   : > { %491 = vlog2.f32 %v271_v22 }
 0x117   : > { %v492_v23 = vpop.eup %491 }
 0x118   : > { %v273_v24 = vmul.f32 0.6931472, %v492_v23 }
 0x11a   : > { %v274_v25 = vadd.f32 %v273_v24, %v265_v10  ;;  %v278_v26 = vpop.xlane.xlu1 %277  ;;  %v285_v33 = vpop.xlane.xlu2 %284 }
 0x11c   : > { %v286_v27 = vsub.f32 %v274_v25, %v278_v26 }
 0x11e   : > { %v287_v28 = vsub.f32 0.0, %v286_v27 }
 0x120   : > { %v288_v29 = vmul.f32 1.442695, %v287_v28 }
 0x122   : > { %493 = vpow2.f32 %v288_v29 }
 0x128   : > { %v494_v30 = vpop.eup %493 }
 0x129   : > { %v290_v31 = vsub.f32 1.0, %v494_v30 }
 0x12b   : > { %v291_v32 = vmul.f32 %v290_v31, %v290_v31 }
 0x12d   : > { %v292_v34 = vmul.f32 %v291_v32, %v285_v33 }
 0x12f   : > { %v293_v35 = vmul.f32 %v292_v34, %v286_v27 }
 0x131   : > { %v294_v36 = vsel %vm251_vm0, %v293_v35, 0.0 }
 0x132   : > { %v297_v37 = vsel %vm296_vm3, %v294_v36, 0.0 }
 0x133   : > { %298 = vadd.xlane.f32.xlu2 %v297_v37 }
 0x1a6   : > { %v299_v38 = vpop.xlane.xlu2 %298 }
 0x1a7   : > { %v300_v39 = vrot.slane %v299_v38, 4 }
 0x1a9   : > { %v301_v40 = vadd.f32 %v300_v39, %v299_v38 }
 0x1ab   : > { %v302_v41 = vrot.slane %v301_v40, 2 }
 0x1ad   : > { %v303_v42 = vadd.f32 %v302_v41, %v301_v40 }
 0x1af   : > { %v304_v43 = vrot.slane %v303_v42, 1 }
 0x1b1   : > { %v305_v44 = vadd.f32 %v304_v43, %v303_v42 }
 0x1b3   : > { %429 = vpush %v305_v44 }
 0x1e4   : > { %s430_s29 = spop %429 }
 0x1e5   : > { %v307_v45 = vstv %s430_s29 }
 0x1e6   : > { %314 = vst [vmem:[%s216_s23] sm:$0xff] %v307_v45 }
 0x1e7   : > { %522 = shalt.err (!%p519_p5)
}
 0x1e8   : > { %431 = dma.vmem_to_hbm [thread:$0]  (%p636_p4), %s329_s27, 128, %s331_s28, %s316_s30  }
 0x1e9 PF: > { %p437_p6 = scmp.ge.s32.totalorder %s573_s17, 2  ;;  %s342_s9 = sand.u32 1, %s553_s12  }
 0x1ea   : > { %s343_s10 = scalar_lea.sflag [#allocation4], %s342_s9 }
 0x1eb   : > { %p434_p7 = pnand %p437_p6, %p643_p8 }
 0x1ed   : > { %p435_p9 = pneg %p434_p7 }
 0x1ef   : > { %548 = dma.done.wait (%p435_p9), %s343_s10, 128  }
 0x1f0   : > { %550 = vsyncadd (%p435_p9), %s343_s10, 4294967168  ;;  %s16_s17 = sadd.s32 1, %s573_s17   ;;  %s716_s12 = smov %s557_s13 }
 0x1f1   : > { %p13_p10 = scmp.ge.s32.totalorder %s16_s17, 4   ;;  %s717_s13 = smov %s561_s14 }
 0x1f2   : > { %s718_s14 = smov %s649_s25  ;;  %s719_s15 = smov %s569_s16 }
 0x1f3   : > { %s720_s16 = smov %s722_s20  ;;  %15 = sbr.rel (!%p13_p10) target bundleno = 4 (0x4), region = 78 }
 0x1f8   :  { %349 = vsyncpa [#allocation4], 1 }
 0x1f9   :  { %351 = vsyncpa [#allocation4 + $0x1], 1 }

</bundles_post_ra>
